<compile_context>
chip_gen: v7x
topology: tpu7x:2x2x1
jax: 0.10.0
libtpu: 0.0.40
codegen_flags: <defaults>
</compile_context>

<pallas_src>
import functools
import math

import jax
import jax.numpy as jnp
from jax import lax
from jax.experimental import pallas as pl
from jax.experimental.pallas import tpu as pltpu


def _convlstm_kernel(w_ref, b_ref, p_ref, c0_ref, h1_ref, c1_ref):
    """One fused gate matmul + LSTM cell update on a (Cp, TM) pixel strip.

    w_ref  : (4*Cp, K)   combined transposed weight (x|h|c paths), gate-padded
    b_ref  : (4*Cp, 1)   pre-summed bias (f32)
    p_ref  : (K, TM)     im2col patches, transposed (features x pixels)
    c0_ref : (Cp, TM)    previous cell state, transposed (f32)
    h1_ref : (Cp, TM)    new hidden state (lane-dense store)
    c1_ref : (Cp, TM)    new cell state   (lane-dense store)
    """
    C = c0_ref.shape[0]

    # Single MXU matmul, f32 accumulation: (4C, K) @ (K, TM) -> (4C, TM).
    wxhc = jnp.dot(w_ref[...], p_ref[...], preferred_element_type=jnp.float32)
    wxhc = wxhc + b_ref[...]                       # (4C, TM) + (4C, 1)

    # Gate slices are sublane-tile-aligned row slices (C is a multiple of 8).
    i = jax.nn.sigmoid(wxhc[0 * C:1 * C, :])
    f = jax.nn.sigmoid(wxhc[1 * C:2 * C, :])
    g = jnp.tanh(wxhc[2 * C:3 * C, :])
    o = jax.nn.sigmoid(wxhc[3 * C:4 * C, :])

    c0 = c0_ref[...]                               # already f32
    c1 = f * c0 + i * g
    h1 = o * jnp.tanh(c1)

    h1_ref[...] = h1.astype(h1_ref.dtype)
    c1_ref[...] = c1.astype(c1_ref.dtype)


def _im2col_t(a, KH, KW):
    """(B, H, W, C) -> (KH*KW*C, B*H*W), taps ordered (dy, dx, c), pixels (b, h, w).

    Built directly in the transposed (features x pixels) layout: one cheap
    channels-first transpose of the raw activation, then the 9 tap slices are
    stacked along axis 0 -- no transpose of the 9x-expanded slab.
    """
    B, H, W, C = a.shape
    a_cf = jnp.moveaxis(a, -1, 0)                                   # (C,B,H,W)
    a_cf = jnp.pad(a_cf, ((0, 0), (0, 0), (1, 1), (1, 1)))          # same-pad
    taps = [a_cf[:, :, dy:dy + H, dx:dx + W].reshape(C, B * H * W)
            for dy in range(KH) for dx in range(KW)]
    return jnp.concatenate(taps, axis=0)


def _pad_gates(w2, n_gates, c, cp):
    """(rows, n_gates*c) -> (rows, n_gates*cp): zero-pad each gate block."""
    if cp == c:
        return w2
    rows = w2.shape[0]
    w3 = w2.reshape(rows, n_gates, c)
    w3 = jnp.pad(w3, ((0, 0), (0, 0), (0, cp - c)))
    return w3.reshape(rows, n_gates * cp)


def _round_up(n, m):
    return ((n + m - 1) // m) * m


def _pick_tm(M, per_col_bytes, fixed_bytes, budget_bytes=40 * (1 << 20)):
    """Largest 128-multiple strip fitting the VMEM budget, preferring >=4 grid
    steps (>=2 per v7x TensorCore), relaxing to >=2, then >=1."""
    for min_steps in (4, 2, 1):
        for tm in (512, 256, 128):
            steps = (M + tm - 1) // tm
            if steps >= min_steps and fixed_bytes + per_col_bytes * tm <= budget_bytes:
                return tm
    return 128


@functools.partial(jax.jit, static_argnames=("compute_dtype",))
def conv_lstm_cell(x, h0, c0, w_ih, w_hh, w_ch, b_ih, b_hh, b_ch,
                   compute_dtype=jnp.bfloat16):
    """x, h0, c0: NHWC.  Weights: HWIO.  Biases: (4C,), (4C,), (3C,).

    compute_dtype: dtype of the matmul operands.  bf16 is the recommended
    default on all TPU generations (v5e/v6e/v7x all have bf16-native MXUs);
    accumulation, bias, c0 and gate math stay f32.  Use f32 for exactness.
    """
    B, H, W, Cin = x.shape
    Cout = h0.shape[-1]
    KH, KW = w_ih.shape[0], w_ih.shape[1]
    taps = KH * KW
    M = B * H * W
    K = taps * (Cin + 2 * Cout)
    out_dtype = c0.dtype

    cs = jnp.dtype(compute_dtype).itemsize
    os_ = jnp.dtype(out_dtype).itemsize
    # Sublane alignment for the gate row-slices: 8 for 32-bit outputs, 16 for 16-bit.
    sub = 8 if os_ >= 4 else 16
    Cp = _round_up(Cout, sub)

    # --- VMEM budget (per pipeline step) --------------------------------------
    # double-buffered: patch strip, c0 strip, two output strips; resident
    # (conservatively counted double-buffered): weight + bias.
    per_col = 2 * K * cs + 2 * Cp * 4 + 2 * 2 * Cp * os_
    fixed = 2 * (4 * Cp * K * cs + 4 * Cp * 4)
    TM = _pick_tm(M, per_col, fixed)
    Mp = _round_up(M, TM)
    need = fixed + per_col * TM
    vmem_limit = int(min(64 * (1 << 20),
                         max(32 * (1 << 20), int(need * 1.3) + (4 << 20))))

    # --- im2col patch slab built directly in (K, Mp) layout -------------------
    px = _im2col_t(x, KH, KW)                       # (9*Cin,  M)
    ph = _im2col_t(h0, KH, KW)                      # (9*Cout, M)
    pc = _im2col_t(c0, KH, KW)                      # (9*Cout, M)
    patches_t = jnp.concatenate([px, ph, pc], axis=0).astype(compute_dtype)
    if Mp > M:
        patches_t = jnp.pad(patches_t, ((0, 0), (0, Mp - M)))

    # --- combined 2D weight: (4*Cp, K); zero block for the c-path "g" gate,
    #     each gate zero-padded from Cout to Cp ---------------------------------
    w_ih2 = _pad_gates(w_ih.reshape(taps * Cin, 4 * Cout), 4, Cout, Cp)
    w_hh2 = _pad_gates(w_hh.reshape(taps * Cout, 4 * Cout), 4, Cout, Cp)
    w_ch2 = w_ch.reshape(taps * Cout, 3 * Cout)
    w_ch4 = jnp.concatenate(
        [w_ch2[:, :2 * Cout],
         jnp.zeros((taps * Cout, Cout), w_ch2.dtype),
         w_ch2[:, 2 * Cout:]], axis=1)
    w_ch4 = _pad_gates(w_ch4, 4, Cout, Cp)
    w_comb = jnp.concatenate([w_ih2, w_hh2, w_ch4], axis=0)   # (K, 4*Cp)
    w_t = w_comb.T.astype(compute_dtype)                      # (4*Cp, K)

    # --- pre-summed bias (c-path g slot is zero), gate-padded -----------------
    b_ch4 = jnp.concatenate(
        [b_ch[:2 * Cout], jnp.zeros((Cout,), b_ch.dtype), b_ch[2 * Cout:]])
    b_sum = (b_ih + b_hh + b_ch4).reshape(4, Cout)
    b_sum = jnp.pad(b_sum, ((0, 0), (0, Cp - Cout)))
    b_comb = b_sum.reshape(4 * Cp, 1).astype(jnp.float32)

    # --- previous cell state, transposed + padded: (Cp, Mp), kept f32 ---------
    c0_t = jnp.moveaxis(c0, -1, 0).reshape(Cout, M).astype(jnp.float32)
    c0_t = jnp.pad(c0_t, ((0, Cp - Cout), (0, Mp - M)))

    cost = pl.CostEstimate(
        flops=2 * (4 * Cp) * K * Mp + 10 * Cp * Mp,
        transcendentals=5 * Cp * Mp,
        bytes_accessed=(K * Mp * cs + 4 * Cp * K * cs + 4 * Cp * 4
                        + Cp * Mp * 4 + 2 * Cp * Mp * os_),
    )

    # NOTE: for Cout < 64 the 4*Cp matmul height under-fills the 256-wide MXU
    # (128 on v5e for Cout < 32); the kernel is HBM-bound there, so no K
    # padding is done (it would only add patch-slab traffic).
    h1_t, c1_t = pl.pallas_call(
        _convlstm_kernel,
        grid=(Mp // TM,),
        in_specs=[
            pl.BlockSpec((4 * Cp, K), lambda m: (0, 0)),    # weight (resident)
            pl.BlockSpec((4 * Cp, 1), lambda m: (0, 0)),    # bias   (resident)
            pl.BlockSpec((K, TM), lambda m: (0, m)),        # patch strip
            pl.BlockSpec((Cp, TM), lambda m: (0, m)),       # c0 strip
        ],
        out_specs=(
            pl.BlockSpec((Cp, TM), lambda m: (0, m)),
            pl.BlockSpec((Cp, TM), lambda m: (0, m)),
        ),
        out_shape=(
            jax.ShapeDtypeStruct((Cp, Mp), out_dtype),
            jax.ShapeDtypeStruct((Cp, Mp), out_dtype),
        ),
        compiler_params=pltpu.CompilerParams(
            dimension_semantics=("parallel",),
            vmem_limit_bytes=vmem_limit),
        cost_estimate=cost,
    )(w_t, b_comb, patches_t, c0_t)

    h1 = jnp.moveaxis(h1_t[:Cout, :M].reshape(Cout, B, H, W), 0, -1)
    c1 = jnp.moveaxis(c1_t[:Cout, :M].reshape(Cout, B, H, W), 0, -1)
    return h1, c1


def _conv_lstm_ref(x, h0, c0, w_ih, w_hh, w_ch, b_ih, b_hh, b_ch):
    """Pure-JAX reference mirroring the PyTorch forward (NHWC/HWIO)."""
    def conv(a, w, b):
        y = lax.conv_general_dilated(
            a, w, window_strides=(1, 1), padding=[(1, 1), (1, 1)],
            dimension_numbers=("NHWC", "HWIO", "NHWC"),
            precision=lax.Precision.HIGHEST)
        return y + b.reshape(1, 1, 1, -1)

    Cout = h0.shape[-1]
    wx = conv(x, w_ih, b_ih)
    wh = conv(h0, w_hh, b_hh)
    wc = conv(c0, w_ch, b_ch)
    zeros = jnp.zeros_like(wc[..., :Cout])
    wc_full = jnp.concatenate(
        [wc[..., :2 * Cout], zeros, wc[..., 2 * Cout:]], axis=-1)
    wxhc = wx + wh + wc_full
    i = jax.nn.sigmoid(wxhc[..., 0 * Cout:1 * Cout])
    f = jax.nn.sigmoid(wxhc[..., 1 * Cout:2 * Cout])
    g = jnp.tanh(wxhc[..., 2 * Cout:3 * Cout])
    o = jax.nn.sigmoid(wxhc[..., 3 * Cout:4 * Cout])
    c1 = f * c0 + i * g
    h1 = o * jnp.tanh(c1)
    return h1, c1


if __name__ == "__main__":
    def _run_case(B, Cin, Cout, H, W, KS, compute_dtype, rtol, atol, seed=0):
        key = jax.random.PRNGKey(seed)
        keys = jax.random.split(key, 9)

        # Deterministic init following reset_parameters(): U(-stdv, stdv),
        # stdv = 1 / sqrt(4 * in_channels * kh * kw).
        stdv = 1.0 / math.sqrt(4 * Cin * KS * KS)
        uni = lambda k, shp: jax.random.uniform(
            k, shp, jnp.float32, minval=-stdv, maxval=stdv)

        # Weights directly in HWIO (kh, kw, in, out); equivalent to transposing
        # a PyTorch OIHW tensor with (2, 3, 1, 0).
        w_ih = uni(keys[0], (KS, KS, Cin, 4 * Cout))
        w_hh = uni(keys[1], (KS, KS, Cout, 4 * Cout))
        w_ch = uni(keys[2], (KS, KS, Cout, 3 * Cout))
        b_ih = uni(keys[3], (4 * Cout,))
        b_hh = uni(keys[4], (4 * Cout,))
        b_ch = uni(keys[5], (3 * Cout,))

        # Inputs (NHWC).
        x = jax.random.normal(keys[6], (B, H, W, Cin), jnp.float32)
        h0 = jax.random.normal(keys[7], (B, H, W, Cout), jnp.float32)
        c0 = jax.random.normal(keys[8], (B, H, W, Cout), jnp.float32)

        h1_ref, c1_ref = _conv_lstm_ref(x, h0, c0, w_ih, w_hh, w_ch,
                                        b_ih, b_hh, b_ch)
        h1, c1 = conv_lstm_cell(x, h0, c0, w_ih, w_hh, w_ch, b_ih, b_hh, b_ch,
                                compute_dtype=compute_dtype)
        jax.block_until_ready((h1, c1))
        assert h1.shape == h1_ref.shape and c1.shape == c1_ref.shape, "shape mismatch"
        assert jnp.allclose(h1, h1_ref, rtol=rtol, atol=atol), \
            f"h1 mismatch ({compute_dtype.__name__}, C={Cout}, HxW={H}x{W})"
        assert jnp.allclose(c1, c1_ref, rtol=rtol, atol=atol), \
            f"c1 mismatch ({compute_dtype.__name__}, C={Cout}, HxW={H}x{W})"

    # Main small config (aligned channels, M already a 128-multiple):
    #   f32 matmul path -> tight check; bf16 path -> loosened for operand rounding.
    _run_case(2, 4, 8, 16, 16, 3, jnp.float32, 1e-3, 1e-3)
    _run_case(2, 4, 8, 16, 16, 3, jnp.bfloat16, 5e-2, 5e-2)

    # Odd-shape config: exercises the Cout->Cp sublane padding and the M->Mp
    # lane padding paths (Cout=6 -> Cp=8, M=220 -> Mp=256).
    _run_case(2, 3, 6, 10, 11, 3, jnp.float32, 1e-3, 1e-3, seed=1)

    print("KERNEL_OK")
</pallas_src>

<mosaic_0001>
module attributes {stable_mosaic.version = 11 : i64} {
  func.func @_convlstm_kernel(%arg0: i32, %arg1: memref<32x180xf32, #tpu.memory_space<vmem>>, %arg2: memref<32x1xf32, #tpu.memory_space<vmem>>, %arg3: memref<180x128xf32, #tpu.memory_space<vmem>>, %arg4: memref<8x128xf32, #tpu.memory_space<vmem>>, %arg5: memref<8x128xf32, #tpu.memory_space<vmem>>, %arg6: memref<8x128xf32, #tpu.memory_space<vmem>>) attributes {dimension_semantics = [#tpu.dimension_semantics<parallel>], iteration_bounds = array<i64: 4>, scalar_prefetch = 0 : i64, scratch_operands = 0 : i64, tpu.core_type = #tpu.core_type<tc>, window_params = [{pipeline_mode = #tpu.pipeline_mode<synchronous>, transform_indices = @transform_0, window_bounds = array<i64: 32, 180>}, {pipeline_mode = #tpu.pipeline_mode<synchronous>, transform_indices = @transform_1, window_bounds = array<i64: 32, 1>}, {transform_indices = @transform_2, window_bounds = array<i64: 180, 128>}, {transform_indices = @transform_3, window_bounds = array<i64: 8, 128>}, {transform_indices = @transform_4, window_bounds = array<i64: 8, 128>}, {transform_indices = @transform_5, window_bounds = array<i64: 8, 128>}]} {
    %c0 = arith.constant 0 : index
    %c0_0 = arith.constant 0 : index
    %0 = vector.load %arg1[%c0, %c0_0] : memref<32x180xf32, #tpu.memory_space<vmem>>, vector<32x180xf32>
    %c0_1 = arith.constant 0 : index
    %c0_2 = arith.constant 0 : index
    %1 = vector.load %arg3[%c0_1, %c0_2] : memref<180x128xf32, #tpu.memory_space<vmem>>, vector<180x128xf32>
    %cst = arith.constant dense<0.000000e+00> : vector<32x128xf32>
    %2 = tpu.matmul %0, %1, %cst {dimension_numbers = #tpu.dot_dimension_numbers<[1], [0], [0], [1], [0, 0, 1, 1], [], []>} : vector<32x180xf32>, vector<180x128xf32>, vector<32x128xf32> -> vector<32x128xf32>
    %c0_3 = arith.constant 0 : index
    %c0_4 = arith.constant 0 : index
    %3 = vector.load %arg2[%c0_3, %c0_4] : memref<32x1xf32, #tpu.memory_space<vmem>>, vector<32x1xf32>
    %4 = vector.broadcast %3 : vector<32x1xf32> to vector<32x128xf32>
    %5 = arith.addf %2, %4 : vector<32x128xf32>
    %6 = vector.extract_strided_slice %5 {offsets = [0, 0], sizes = [8, 128], strides = [1, 1]} : vector<32x128xf32> to vector<8x128xf32>
    %7 = arith.negf %6 : vector<8x128xf32>
    %8 = math.exp %7 : vector<8x128xf32>
    %cst_5 = arith.constant 1.000000e+00 : f32
    %9 = vector.broadcast %cst_5 : f32 to vector<8x128xf32>
    %10 = arith.addf %9, %8 : vector<8x128xf32>
    %11 = arith.divf %9, %10 : vector<8x128xf32>
    %12 = vector.extract_strided_slice %5 {offsets = [8, 0], sizes = [8, 128], strides = [1, 1]} : vector<32x128xf32> to vector<8x128xf32>
    %13 = arith.negf %12 : vector<8x128xf32>
    %14 = math.exp %13 : vector<8x128xf32>
    %cst_6 = arith.constant 1.000000e+00 : f32
    %15 = vector.broadcast %cst_6 : f32 to vector<8x128xf32>
    %16 = arith.addf %15, %14 : vector<8x128xf32>
    %17 = arith.divf %15, %16 : vector<8x128xf32>
    %18 = vector.extract_strided_slice %5 {offsets = [16, 0], sizes = [8, 128], strides = [1, 1]} : vector<32x128xf32> to vector<8x128xf32>
    %19 = math.tanh %18 : vector<8x128xf32>
    %20 = vector.extract_strided_slice %5 {offsets = [24, 0], sizes = [8, 128], strides = [1, 1]} : vector<32x128xf32> to vector<8x128xf32>
    %21 = arith.negf %20 : vector<8x128xf32>
    %22 = math.exp %21 : vector<8x128xf32>
    %cst_7 = arith.constant 1.000000e+00 : f32
    %23 = vector.broadcast %cst_7 : f32 to vector<8x128xf32>
    %24 = arith.addf %23, %22 : vector<8x128xf32>
    %25 = arith.divf %23, %24 : vector<8x128xf32>
    %c0_8 = arith.constant 0 : index
    %c0_9 = arith.constant 0 : index
    %26 = vector.load %arg4[%c0_8, %c0_9] : memref<8x128xf32, #tpu.memory_space<vmem>>, vector<8x128xf32>
    %27 = arith.mulf %17, %26 : vector<8x128xf32>
    %28 = arith.mulf %11, %19 : vector<8x128xf32>
    %29 = arith.addf %27, %28 : vector<8x128xf32>
    %30 = math.tanh %29 : vector<8x128xf32>
    %31 = arith.mulf %25, %30 : vector<8x128xf32>
    %c0_10 = arith.constant 0 : index
    %c0_11 = arith.constant 0 : index
    %32 = vector.load %arg5[%c0_10, %c0_11] : memref<8x128xf32, #tpu.memory_space<vmem>>, vector<8x128xf32>
    tpu.vector_store %arg5[%c0_10, %c0_11], %31 {strides = array<i32>} : memref<8x128xf32, #tpu.memory_space<vmem>>, vector<8x128xf32>,
    %c0_12 = arith.constant 0 : index
    %c0_13 = arith.constant 0 : index
    %33 = vector.load %arg6[%c0_12, %c0_13] : memref<8x128xf32, #tpu.memory_space<vmem>>, vector<8x128xf32>
    tpu.vector_store %arg6[%c0_12, %c0_13], %29 {strides = array<i32>} : memref<8x128xf32, #tpu.memory_space<vmem>>, vector<8x128xf32>,
    return
  }
  func.func @transform_0(%arg0: i32) -> (i32, i32) {
    %c0_i32 = arith.constant 0 : i32
    %c0_i32_0 = arith.constant 0 : i32
    %c0_i32_1 = arith.constant 0 : i32
    return %c0_i32, %c0_i32_0 : i32, i32
  }
  func.func @transform_1(%arg0: i32) -> (i32, i32) {
    %c0_i32 = arith.constant 0 : i32
    %c0_i32_0 = arith.constant 0 : i32
    %c0_i32_1 = arith.constant 0 : i32
    return %c0_i32, %c0_i32_0 : i32, i32
  }
  func.func @transform_2(%arg0: i32) -> (i32, i32) {
    %c0_i32 = arith.constant 0 : i32
    %c0_i32_0 = arith.constant 0 : i32
    return %c0_i32, %arg0 : i32, i32
  }
  func.func @transform_3(%arg0: i32) -> (i32, i32) {
    %c0_i32 = arith.constant 0 : i32
    %c0_i32_0 = arith.constant 0 : i32
    return %c0_i32, %arg0 : i32, i32
  }
  func.func @transform_4(%arg0: i32) -> (i32, i32) {
    %c0_i32 = arith.constant 0 : i32
    %c0_i32_0 = arith.constant 0 : i32
    return %c0_i32, %arg0 : i32, i32
  }
  func.func @transform_5(%arg0: i32) -> (i32, i32) {
    %c0_i32 = arith.constant 0 : i32
    %c0_i32_0 = arith.constant 0 : i32
    return %c0_i32, %arg0 : i32, i32
  }
}

</mosaic_0001>

<bundles_post_ra>
// kernel: conv_lstm_cell.1
= control target key start
LH: loop header
LB: loop body
LE: loop exit
PB: predicated region body
PF: predicated region fallthrough
CT: control target
= control target key end

     0   :  { %s839_s18 = smov 0   ;;  %s841_s19 = smov 0   ;;  %s1036_s0 = inlined_call_operand.vmem [shape: f32[32,180], index: 0, kind: input, shape index: {}]   ;;  %s1037_s1 = inlined_call_operand.vmem [shape: f32[32,1], index: 1, kind: input, shape index: {}]   ;;  %s1038_s2 = inlined_call_operand.vmem [shape: f32[180,512], index: 2, kind: input, shape index: {}]   ;;  %s1039_s3 = inlined_call_operand.vmem [shape: f32[8,512], index: 3, kind: input, shape index: {}]   ;;  %s1040_s4 = inlined_call_operand.vmem [shape: f32[8,512], index: 4, kind: output, shape index: {0}]   ;;  %s1041_s5 = inlined_call_operand.vmem [shape: f32[8,512], index: 5, kind: output, shape index: {1}]  }
   0x1   :  { %s843_s20 = smov 0  }
   0x2 LB: > { %s659_s21 = sadd.s32 4294967295, %s804_s20   ;;  %s856_s22 = sadd.s32 1, %s804_s20   ;;  %s804_s20 = sphi %s843_s20, %s1044_s20   ;;  %s800_s19 = sphi %s841_s19, %s1043_s19   ;;  %s796_s18 = sphi %s839_s18, %s1042_s18  }
   0x3   : > { %s62_s23 = ssub.s32 %s804_s20, %s856_s22  ;;  %s65_s24 = sadd.s32 1, %s800_s19 }
   0x4   : > { %p63_p0 = scmp.eq.s32.totalorder %s62_s23, 0  ;;  %p72_p1 = scmp.ne.s32.totalorder %s800_s19, %s796_s18 }
   0x5   : > { %p73_p2 = scmp.eq.s32.totalorder %s804_s20, 0  ;;  %p662_p4 = scmp.ge.s32.totalorder %s804_s20, 4 }
   0x6   : > { %s865_s25 = scalar_select %p63_p0, %s800_s19, %s65_s24  }
   0x7   : > { %p74_p3 = por %p73_p2, %p72_p1  ;;  %182 = sbr.rel (%p662_p4) target bundleno = 41 (0x29), region = 24 }
   0xe   : > { %185 = sbr.rel (!%p74_p3) target bundleno = 41 (0x29), region = 28  ;;  %s187_s26 = sand.u32 (%p74_p3), 1, %s800_s19  }
   0xf   : > { %s663_s27 = sshll.u32 (%p74_p3), %s804_s20, 3  ;;  %s735_s28 = smul.u32 (%p74_p3), 184, %s187_s26 }
  0x10   : > { %s873_s6 = scalar_lea.vmem (%p74_p3), %s1038_s2, %s663_s27 }
  0x11   : > { %v263_v0 = vld [vmem:[%s873_s6] sm:$0xff] (%p74_p3)  ;;  %s881_s7 = scalar_lea.vmem (%p74_p3), [#allocation2], %s735_s28 }
  0x12   : > { %v265_v1 = vld [vmem:[%s873_s6 + $0x20] sm:$0xff] (%p74_p3)  ;;  %264 = vst [vmem:[%s881_s7] sm:$0xff] (%p74_p3), %v263_v0 }
  0x13   : > { %v267_v2 = vld [vmem:[%s873_s6 + $0x40] sm:$0xff] (%p74_p3)  ;;  %266 = vst [vmem:[%s881_s7 + $0x8] sm:$0xff] (%p74_p3), %v265_v1 }
  0x14   : > { %v269_v3 = vld [vmem:[%s873_s6 + $0x60] sm:$0xff] (%p74_p3)  ;;  %268 = vst [vmem:[%s881_s7 + $0x10] sm:$0xff] (%p74_p3), %v267_v2 }
  0x15   : > { %v271_v4 = vld [vmem:[%s873_s6 + $0x80] sm:$0xff]  ;;  %270 = vst [vmem:[%s881_s7 + $0x18] sm:$0xff] %v269_v3 }
  0x16   : > { %v273_v5 = vld [vmem:[%s873_s6 + $0xa0] sm:$0xff]  ;;  %272 = vst [vmem:[%s881_s7 + $0x20] sm:$0xff] %v271_v4 }
  0x17   : > { %274 = vst [vmem:[%s881_s7 + $0x28] sm:$0xff] %v273_v5  ;;  %v275_v6 = vld [vmem:[%s873_s6 + $0xc0] sm:$0xff] }
  0x18   : > { %v277_v7 = vld [vmem:[%s873_s6 + $0xe0] sm:$0xff]  ;;  %276 = vst [vmem:[%s881_s7 + $0x30] sm:$0xff] %v275_v6 }
  0x19   : > { %v279_v8 = vld [vmem:[%s873_s6 + $0x100] sm:$0xff]  ;;  %278 = vst [vmem:[%s881_s7 + $0x38] sm:$0xff] %v277_v7 }
  0x1a   : > { %280 = vst [vmem:[%s881_s7 + $0x40] sm:$0xff] %v279_v8  ;;  %v281_v9 = vld [vmem:[%s873_s6 + $0x120] sm:$0xff] }
  0x1b   : > { %v283_v10 = vld [vmem:[%s873_s6 + $0x140] sm:$0xff]  ;;  %282 = vst [vmem:[%s881_s7 + $0x48] sm:$0xff] %v281_v9 }
  0x1c   : > { %v285_v11 = vld [vmem:[%s873_s6 + $0x160] sm:$0xff]  ;;  %284 = vst [vmem:[%s881_s7 + $0x50] sm:$0xff] %v283_v10 }
  0x1d   : > { %286 = vst [vmem:[%s881_s7 + $0x58] sm:$0xff] %v285_v11  ;;  %v287_v12 = vld [vmem:[%s873_s6 + $0x180] sm:$0xff] }
  0x1e   : > { %v289_v13 = vld [vmem:[%s873_s6 + $0x1a0] sm:$0xff]  ;;  %288 = vst [vmem:[%s881_s7 + $0x60] sm:$0xff] %v287_v12 }
  0x1f   : > { %v291_v14 = vld [vmem:[%s873_s6 + $0x1c0] sm:$0xff]  ;;  %290 = vst [vmem:[%s881_s7 + $0x68] sm:$0xff] %v289_v13 }
  0x20   : > { %292 = vst [vmem:[%s881_s7 + $0x70] sm:$0xff] %v291_v14  ;;  %v293_v15 = vld [vmem:[%s873_s6 + $0x1e0] sm:$0xff] }
  0x21   : > { %v295_v16 = vld [vmem:[%s873_s6 + $0x200] sm:$0xff]  ;;  %294 = vst [vmem:[%s881_s7 + $0x78] sm:$0xff] %v293_v15 }
  0x22   : > { %v297_v17 = vld [vmem:[%s873_s6 + $0x220] sm:$0xff]  ;;  %296 = vst [vmem:[%s881_s7 + $0x80] sm:$0xff] %v295_v16 }
  0x23   : > { %298 = vst [vmem:[%s881_s7 + $0x88] sm:$0xff] %v297_v17  ;;  %v299_v18 = vld [vmem:[%s873_s6 + $0x240] sm:$0xff] }
  0x24   : > { %v301_v19 = vld [vmem:[%s873_s6 + $0x260] sm:$0xff]  ;;  %300 = vst [vmem:[%s881_s7 + $0x90] sm:$0xff] %v299_v18 }
  0x25   : > { %v303_v20 = vld [vmem:[%s873_s6 + $0x280] sm:$0xff]  ;;  %302 = vst [vmem:[%s881_s7 + $0x98] sm:$0xff] %v301_v19 }
  0x26   : > { %304 = vst [vmem:[%s881_s7 + $0xa0] sm:$0xff] %v303_v20  ;;  %v305_v21 = vld [vmem:[%s873_s6 + $0x2a0] sm:$0xff] }
  0x27   : > { %v307_v22 = vld [vmem:[%s873_s6 + $0x2c0] sm:$0xff]  ;;  %306 = vst [vmem:[%s881_s7 + $0xa8] sm:$0xff] %v305_v21 }
  0x28   : > { %308 = vst [vmem:[%s881_s7 + $0xb0] sm:$0xff] %v307_v22 }
  0x29 PF: > { %p664_p5 = scmp.ge.s32.totalorder %s804_s20, 1  ;;  %p320_p6 = scmp.lt.s32.totalorder %s804_s20, 5 }
  0x2b   : > { %p321_p7 = pnand %p664_p5, %p320_p6 }
  0x2c   : > { %s327_s8 = sand.u32 (!%p321_p7), 1, %s796_s18   ;;  %v374_v23 = vld [vmem:[%s1036_s0 + $0x8] sm:$0xff] (!%p321_p7)  ;;  %vm428_vm0 = vcmask (!%p321_p7), 424960   ;;  %v806_v24 = vmov (!%p321_p7), 0.0|0.0   ;;  %v807_v26 = vmov (!%p321_p7), 0   ;;  %v404_v27 = vld [vmem:[%s1037_s1] sm:$0xff] (!%p321_p7) }
  0x2d   : > { %324 = sbr.rel (%p321_p7) target bundleno = 359 (0x167), region = 70  ;;  %678 = vmatprep.subr.bf16.mxu0 (!%p321_p7), %v806_v24  ;;  %711 = vmatprep.subr.bf16.mxu1 (!%p321_p7), %v806_v24  ;;  %v378_v25 = vld [vmem:[%s1036_s0 + $0x28] sm:$0xff] (!%p321_p7)  ;;  %v406_v38 = vld [vmem:[%s1037_s1 + $0x10] sm:$0xff] (!%p321_p7)  ;;  %v407_v41 = vld [vmem:[%s1037_s1 + $0x18] sm:$0xff] (!%p321_p7)  ;;  %v808_v0 = vmov (!%p321_p7), 0.0   ;;  %vm441_vm1 = vcmask (!%p321_p7), 1043456  }
  0x2e   : > { %s736_s11 = smul.u32 (!%p321_p7), 184, %s327_s8  ;;  %669 = vmatprep.mubr.msk.f32.mxu0 (!%p321_p7), %vm428_vm0, %v374_v23  ;;  %764 = vset.pattern.permute.xlu0 (!%p321_p7), %v807_v26  ;;  %v405_v33 = vld [vmem:[%s1037_s1 + $0x8] sm:$0xff] (!%p321_p7)  ;;  %v373_v2 = vld [vmem:[%s1036_s0] sm:$0xff] (!%p321_p7)  ;;  %v376_v4 = vld [vmem:[%s1036_s0 + $0x18] sm:$0xff] (!%p321_p7)  ;;  %p361_p8 = scmp.lt.s32.totalorder (!%p321_p7), %s659_s21, 3 }
  0x2f   : > { %671 = vmatprep.mubr.msk.f32.mxu1 (!%p321_p7), %vm428_vm0, %v378_v25  ;;  %765 = vset.pattern.permute.xlu1 (!%p321_p7), %v807_v26  ;;  %v377_v3 = vld [vmem:[%s1036_s0 + $0x20] sm:$0xff] (!%p321_p7)  ;;  %v380_v5 = vld [vmem:[%s1036_s0 + $0x38] sm:$0xff] (!%p321_p7)  ;;  %v375_v6 = vld [vmem:[%s1036_s0 + $0x10] sm:$0xff] (!%p321_p7) }
  0x30   : > { %s939_s16 = scalar_lea.vmem (!%p321_p7), [#allocation2], %s736_s11  ;;  %410 = vperm.xlu0 (!%p321_p7), %764, %v404_v27   ;;  %420 = vperm.xlu1 (!%p321_p7), %765, %v406_v38   ;;  %v379_v7 = vld [vmem:[%s1036_s0 + $0x30] sm:$0xff] (!%p321_p7) }
  0x31   : > { %v381_v28 = vld [vmem:[%s939_s16] sm:$0xff] (!%p321_p7)  ;;  %v382_v29 = vld [vmem:[%s939_s16 + $0x8] sm:$0xff] (!%p321_p7)  ;;  %v383_v30 = vld [vmem:[%s939_s16 + $0x10] sm:$0xff] (!%p321_p7) }
  0x32   : > { %v679_v31 = vpack.c.bf16 (!%p321_p7), %v382_v29, %v381_v28  ;;  %v384_v32 = vld [vmem:[%s939_s16 + $0x18] sm:$0xff] (!%p321_p7)  ;;  %v385_v35 = vld [vmem:[%s939_s16 + $0x20] sm:$0xff] (!%p321_p7)  ;;  %v386_v36 = vld [vmem:[%s939_s16 + $0x28] sm:$0xff] (!%p321_p7) }
  0x33   : > { %v682_v34 = vpack.c.bf16 (!%p321_p7), %v384_v32, %v383_v30  ;;  %v685_v37 = vpack.c.bf16 (!%p321_p7), %v386_v36, %v385_v35  ;;  %v387_v39 = vld [vmem:[%s939_s16 + $0x30] sm:$0xff] (!%p321_p7)  ;;  %v388_v40 = vld [vmem:[%s939_s16 + $0x38] sm:$0xff] (!%p321_p7)  ;;  %v389_v43 = vld [vmem:[%s939_s16 + $0x40] sm:$0xff] (!%p321_p7) }
  0x34   : > { %680 = vmatpush1.bf16.msra.mxu0 %v679_v31  ;;  %723 = vmatpush1.bf16.msra.mxu1 %v679_v31  ;;  %v688_v42 = vpack.c.bf16 %v388_v40, %v387_v39  ;;  %v390_v44 = vld [vmem:[%s939_s16 + $0x48] sm:$0xff]  ;;  %v391_v46 = vld [vmem:[%s939_s16 + $0x50] sm:$0xff]  ;;  %v392_v47 = vld [vmem:[%s939_s16 + $0x58] sm:$0xff]  ;;  %s1046_s21 = smov (!%p361_p8, %s659_s21), 3 }
  0x35   : > { %681 = vmatprep.subr.bf16.mxu0 %v806_v24  ;;  %712 = vmatprep.subr.bf16.mxu1 %v806_v24  ;;  %v691_v45 = vpack.c.bf16 %v390_v44, %v389_v43  ;;  %v694_v48 = vpack.c.bf16 %v392_v47, %v391_v46  ;;  %v393_v49 = vld [vmem:[%s939_s16 + $0x60] sm:$0xff]  ;;  %v394_v50 = vld [vmem:[%s939_s16 + $0x68] sm:$0xff]  ;;  %v395_v52 = vld [vmem:[%s939_s16 + $0x70] sm:$0xff]  ;;  %s665_s15 = sshll.u32 %s1046_s21, 3 }
  0x36   : > { %415 = vperm.xlu0 %764, %v405_v33   ;;  %425 = vperm.xlu1 %765, %v407_v41   ;;  %v697_v51 = vpack.c.bf16 %v394_v50, %v393_v49  ;;  %v396_v53 = vld [vmem:[%s939_s16 + $0x78] sm:$0xff]  ;;  %v397_v55 = vld [vmem:[%s939_s16 + $0x80] sm:$0xff]  ;;  %v398_v56 = vld [vmem:[%s939_s16 + $0x88] sm:$0xff]  ;;  %s364_s18 = scalar_lea.vmem %s1039_s3, %s665_s15  ;;  %s372_s20 = scalar_lea.vmem %s1041_s5, %s665_s15 }
  0x37   : > { %v700_v54 = vpack.c.bf16 %v396_v53, %v395_v52  ;;  %v703_v57 = vpack.c.bf16 %v398_v56, %v397_v55  ;;  %v399_v58 = vld [vmem:[%s939_s16 + $0x90] sm:$0xff]  ;;  %v400_v59 = vld [vmem:[%s939_s16 + $0x98] sm:$0xff]  ;;  %v401_v61 = vld [vmem:[%s939_s16 + $0xa0] sm:$0xff]  ;;  %s368_s27 = scalar_lea.vmem %s1040_s4, %s665_s15 }
  0x38   : > { %683 = vmatpush1.bf16.msra.mxu0 %v682_v34  ;;  %724 = vmatpush1.bf16.msra.mxu1 %v682_v34  ;;  %v706_v60 = vpack.c.bf16 %v400_v59, %v399_v58  ;;  %v402_v62 = vld [vmem:[%s939_s16 + $0xa8] sm:$0xff]  ;;  %v403_v1 = vld [vmem:[%s939_s16 + $0xb0] sm:$0xf] }
  0x39   : > { %684 = vmatprep.subr.bf16.mxu0 %v806_v24  ;;  %713 = vmatprep.subr.bf16.mxu1 %v806_v24  ;;  %v709_v63 = vpack.c.bf16 %v402_v62, %v401_v61  ;;  %v549_v35 = vld [vmem:[%s364_s18] sm:$0xff] }
  0x3c   : > { %686 = vmatpush1.bf16.msra.mxu0 %v685_v37  ;;  %725 = vmatpush1.bf16.msra.mxu1 %v685_v37 }
  0x3d   : > { %687 = vmatprep.subr.bf16.mxu0 %v806_v24  ;;  %714 = vmatprep.subr.bf16.mxu1 %v806_v24 }
  0x40   : > { %689 = vmatpush1.bf16.msra.mxu0 %v688_v42  ;;  %726 = vmatpush1.bf16.msra.mxu1 %v688_v42 }
  0x41   : > { %690 = vmatprep.subr.bf16.mxu0 %v806_v24  ;;  %715 = vmatprep.subr.bf16.mxu1 %v806_v24 }
  0x44   : > { %692 = vmatpush1.bf16.msra.mxu0 %v691_v45  ;;  %727 = vmatpush1.bf16.msra.mxu1 %v691_v45 }
  0x45   : > { %693 = vmatprep.subr.bf16.mxu0 %v806_v24  ;;  %716 = vmatprep.subr.bf16.mxu1 %v806_v24 }
  0x48   : > { %695 = vmatpush1.bf16.msra.mxu0 %v694_v48  ;;  %728 = vmatpush1.bf16.msra.mxu1 %v694_v48 }
  0x49   : > { %696 = vmatprep.subr.bf16.mxu0 %v806_v24  ;;  %717 = vmatprep.subr.bf16.mxu1 %v806_v24 }
  0x4c   : > { %698 = vmatpush1.bf16.msra.mxu0 %v697_v51  ;;  %729 = vmatpush1.bf16.msra.mxu1 %v697_v51 }
  0x4d   : > { %699 = vmatprep.subr.bf16.mxu0 %v806_v24  ;;  %718 = vmatprep.subr.bf16.mxu1 %v806_v24 }
  0x50   : > { %701 = vmatpush1.bf16.msra.mxu0 %v700_v54  ;;  %730 = vmatpush1.bf16.msra.mxu1 %v700_v54 }
  0x51   : > { %702 = vmatprep.subr.bf16.mxu0 %v806_v24  ;;  %719 = vmatprep.subr.bf16.mxu1 %v806_v24 }
  0x54   : > { %704 = vmatpush1.bf16.msra.mxu0 %v703_v57  ;;  %731 = vmatpush1.bf16.msra.mxu1 %v703_v57 }
  0x55   : > { %705 = vmatprep.subr.bf16.mxu0 %v806_v24  ;;  %720 = vmatprep.subr.bf16.mxu1 %v806_v24 }
  0x58   : > { %707 = vmatpush1.bf16.msra.mxu0 %v706_v60  ;;  %732 = vmatpush1.bf16.msra.mxu1 %v706_v60 }
  0x59   : > { %708 = vmatprep.subr.bf16.mxu0 %v806_v24  ;;  %721 = vmatprep.subr.bf16.mxu1 %v806_v24 }
  0x5c   : > { %710 = vmatpush1.bf16.msra.mxu0 %v709_v63  ;;  %733 = vmatpush1.bf16.msra.mxu1 %v709_v63 }
  0x5d   : > { %489 = vmatprep.subr.mxu0 %v808_v0  ;;  %722 = vmatprep.subr.mxu1 %v808_v0 }
  0x60   : > { %668 = vmatpush1.msk.msra.mxu0 %vm441_vm1, %v403_v1  ;;  %734 = vmatpush1.msk.msra.mxu1 %vm441_vm1, %v403_v1 }
  0x61   : > { %510 = vmatmul.mubr.f32.vlgmr.msra.gmra.mrb[0].mxu0 %v373_v2  ;;  %520 = vmatmul.mubr.f32.vlgmr.msra.gmra.mrb[0].mxu1 %v377_v3 }
  0x62   : > { %670 = vmatprep.mubr.msk.f32.mxu0 %vm428_vm0, %v376_v4  ;;  %672 = vmatprep.mubr.msk.f32.mxu1 %vm428_vm0, %v380_v5 }
  0x65   : > { %515 = vmatmul.mubr.f32.gmra.mrb[2].mxu0 %v375_v6  ;;  %525 = vmatmul.mubr.f32.gmra.mrb[2].mxu1 %v379_v7 }
  0xaf   : > { %v411_v8 = vpop.permute.xlu0 %410  ;;  %v421_v14 = vpop.permute.xlu1 %420 }
  0xb5   : > { %v416_v15 = vpop.permute.xlu0 %415  ;;  %v426_v23 = vpop.permute.xlu1 %425 }
 0x134   : > { %v511_v9 = vpop.f32.mrb[0].mxu0  ;;  %v521_v10 = vpop.f32.mrb[0].mxu1 }
 0x135   : > { %v512_v11 = vadd.f32 %v511_v9, %v411_v8  ;;  %v513_v12 = vpop.f32.mrb[1].mxu0  ;;  %v523_v13 = vpop.f32.mrb[1].mxu1  ;;  %v522_v25 = vadd.f32 %v521_v10, %v421_v14 }
 0x137   : > { %v673_v16 = vmul.f32 -1.442695, %v512_v11 }
 0x138   : > { %v516_v17 = vpop.f32.mrb[2].mxu0  ;;  %v526_v18 = vpop.f32.mrb[2].mxu1 }
 0x139   : > { %766 = vpow2.f32 %v673_v16  ;;  %v517_v19 = vadd.f32 %v516_v17, %v416_v15  ;;  %v518_v20 = vpop.f32.mrb[3].mxu0  ;;  %v528_v21 = vpop.f32.mrb[3].mxu1  ;;  %v527_v24 = vadd.f32 %v526_v18, %v426_v23 }
 0x13b   : > { %v674_v22 = vmul.f32 -1.442695, %v517_v19  ;;  %v675_v27 = vmul.f32 -1.442695, %v527_v24 }
 0x13d   : > { %768 = vpow2.f32 %v674_v22 }
 0x13e   : > { %770 = vtanh.f32 %v522_v25 }
 0x143   : > { %v767_v26 = vpop.eup %766 }
 0x144   : > { %v533_v28 = vadd.f32 1.0, %v767_v26 }
 0x146   : > { %772 = vrcp.f32 %v533_v28 }
 0x147   : > { %v769_v29 = vpop.eup %768  ;;  %774 = vpow2.f32 %v675_v27 }
 0x148   : > { %v539_v30 = vadd.f32 1.0, %v769_v29  ;;  %v771_v31 = vpop.eup %770 }
 0x14a   : > { %776 = vrcp.f32 %v539_v30 }
 0x150   : > { %v773_v32 = vpop.eup %772 }
 0x151   : > { %v775_v33 = vpop.eup %774  ;;  %v551_v34 = vmul.f32 %v773_v32, %v771_v31 }
 0x152   : > { %v546_v37 = vadd.f32 1.0, %v775_v33 }
 0x154   : > { %v777_v36 = vpop.eup %776  ;;  %778 = vrcp.f32 %v546_v37 }
 0x155   : > { %v550_v38 = vmul.f32 %v777_v36, %v549_v35 }
 0x157   : > { %v552_v39 = vadd.f32 %v551_v34, %v550_v38 }
 0x159   : > { %780 = vtanh.f32 %v552_v39  ;;  %556 = vst [vmem:[%s372_s20] sm:$0xff] %v552_v39 }
 0x15e   : > { %v779_v40 = vpop.eup %778 }
 0x163   : > { %v781_v41 = vpop.eup %780 }
 0x164   : > { %v554_v42 = vmul.f32 %v781_v41, %v779_v40 }
 0x166   : > { %555 = vst [vmem:[%s368_s27] sm:$0xff] %v554_v42 }
 0x167 PF: > { %p13_p9 = scmp.ge.s32.totalorder %s856_s22, 6   ;;  %s1042_s18 = smov %s800_s19 }
 0x168   : > { %s1043_s19 = smov %s865_s25  ;;  %s1044_s20 = smov %s856_s22 }
 0x169   :  { %15 = sbr.rel (!%p13_p9) target bundleno = 2 (0x2), region = 124 }

</bundles_post_ra>
